<compile_context>
chip_gen: v5e
topology: v5e:2x2
jax: 0.10.0
libtpu: 0.0.40
codegen_flags: <defaults>
</compile_context>

<pallas_src>
import functools
import math

import jax
import jax.numpy as jnp
from jax.experimental import pallas as pl
from jax.experimental.pallas import tpu as pltpu

_LANES = 128
_ROW_TILE = 2048          # 2048 rows x 128 lanes x 4 B = 1 MiB per buffer; with
                          # double buffering on 3 streams ~6 MiB live -> fits the
                          # scoped-VMEM default on v5e / v6e / v7x alike.
_XLA_FALLBACK_ELEMS = 1 << 15   # below this, pallas_call overhead dwarfs the work


def _make_pe_table(max_len: int, d_model: int) -> jnp.ndarray:
    """Deterministic positional-encoding table (glue, plain JAX)."""
    position = jnp.arange(0.0, max_len, dtype=jnp.float32)[:, None]          # (L, 1)
    div_term = jnp.exp(jnp.arange(0.0, d_model, 2, dtype=jnp.float32)
                       * -(math.log(10000.0) / d_model))                     # (D/2,)
    pe = jnp.zeros((max_len, d_model), dtype=jnp.float32)
    pe = pe.at[:, 0::2].set(jnp.sin(position * div_term))
    pe = pe.at[:, 1::2].set(jnp.cos(position * div_term))
    return pe                                                                # (L, D)


def _pe_dropout_kernel(seed_ref, x_ref, pe_ref, o_ref, *,
                       training, keep_threshold, keep_scale, use_hw_prng,
                       rows_total, block_rows, cols):
    # x_ref / pe_ref / o_ref are (block_rows, cols): batch dim squeezed, so the
    # add is a plain 2-D elementwise op.  pe stays f32 and the add accumulates
    # in f32; the cast to the output dtype only happens at the store.
    y = x_ref[...].astype(jnp.float32) + pe_ref[...]

    if training and keep_threshold > 0:
        r = pl.program_id(0)                       # row-tile index
        b = pl.program_id(1)                       # batch index (innermost axis)
        if use_hw_prng:
            # Hardware PRNG: distinct stream per (seed, row-tile, batch) block.
            # Nearly free on the VALU slot -> training mode stays HBM-bound.
            pltpu.prng_seed(seed_ref[0], r, b)
            bits = pltpu.prng_random_bits(y.shape)
            if bits.dtype != jnp.uint32:
                bits = pltpu.bitcast(bits, jnp.uint32)
        else:
            # Software counter-based hash (non-TPU / interpret-mode fallback):
            # 2 avalanche rounds, scalar block-base hoisted off the vector path.
            row = jax.lax.broadcasted_iota(jnp.int32, y.shape, 0).astype(jnp.uint32)
            col = jax.lax.broadcasted_iota(jnp.int32, y.shape, 1).astype(jnp.uint32)
            base = ((b.astype(jnp.uint32) * jnp.uint32(rows_total)
                     + r.astype(jnp.uint32) * jnp.uint32(block_rows))
                    * jnp.uint32(cols))            # scalar, unique per block
            if cols == 128:
                idx = (row << jnp.uint32(7)) + col
            else:
                idx = row * jnp.uint32(cols) + col
            h = (base + idx + seed_ref[0].astype(jnp.uint32)) * jnp.uint32(0x9E3779B9)
            h = (h ^ (h >> jnp.uint32(16))) * jnp.uint32(0x7FEB352D)
            bits = h ^ (h >> jnp.uint32(15))
        # Integer threshold compare: keep with prob (1 - p), no float convert.
        keep = bits >= jnp.uint32(keep_threshold)
        y = jnp.where(keep, y * jnp.float32(keep_scale), jnp.float32(0.0))

    o_ref[...] = y.astype(o_ref.dtype)


def positional_encoding_forward(x, pe, *, p=0.1, training=True, seed=0,
                                use_hw_prng=None,
                                min_pallas_elements=_XLA_FALLBACK_ELEMS):
    """dropout(x + pe[:S]) with x: (B, S, D) and pe: (max_len, D)."""
    B, S, D = x.shape
    assert 0.0 <= p < 1.0, "dropout p must be in [0, 1)"
    pe_s = pe[:S].astype(jnp.float32)              # (S, D) slice, kept in f32
    apply_dropout = training and p > 0.0

    # Tiny inputs: fixed pallas_call / per-grid-step overhead dwarfs the work on
    # every TPU generation -> plain XLA add + dropout.
    if B * S * D < min_pallas_elements:
        y = x.astype(jnp.float32) + pe_s[None]
        if apply_dropout:
            keep = jax.random.bernoulli(jax.random.PRNGKey(seed), 1.0 - p, y.shape)
            y = jnp.where(keep, y * (1.0 / (1.0 - p)), 0.0)
        return y.astype(x.dtype)

    if use_hw_prng is None:
        # HW PRNG only lowers on real TPUs; software hash elsewhere (interpret).
        use_hw_prng = jax.default_backend() == "tpu"

    # Lane-dense view: treat (S, D) as (R, 128) rows when possible so the last
    # BlockSpec dim is 128 (unmasked full-width stores even when D < 128).
    total = S * D
    if total % _LANES == 0:
        R, C = total // _LANES, _LANES
    else:
        # Natural (S, D) layout (masked lane stores when D < 128), but the row
        # axis is still tiled below so pipelining / VMEM stay bounded.
        R, C = S, D

    # Row tiling: TR == R (full dim) is always legal; otherwise TR is a multiple
    # of 8 (a partial last block is handled by Pallas).
    TR = R if R <= _ROW_TILE else _ROW_TILE
    nR = pl.cdiv(R, TR)
    # v7x HBM bandwidth is per-TensorCore: make sure single-batch inputs still
    # produce >= 2 parallel blocks so both cores stream.
    if B == 1 and nR == 1 and R > 8:
        TR = (((R + 1) // 2) + 7) // 8 * 8
        nR = pl.cdiv(R, TR)

    x2 = x.reshape(B, R, C)
    pe2 = pe_s.reshape(R, C)
    seed_arr = jnp.array([seed], dtype=jnp.int32)  # scalar-prefetch arg (SMEM)

    kernel = functools.partial(
        _pe_dropout_kernel,
        training=apply_dropout,
        keep_threshold=int(round(p * (1 << 32))),  # drop iff bits < p * 2^32
        keep_scale=float(1.0 / (1.0 - p)),
        use_hw_prng=bool(use_hw_prng),
        rows_total=R, block_rows=TR, cols=C)

    out = pl.pallas_call(
        kernel,
        out_shape=jax.ShapeDtypeStruct((B, R, C), x.dtype),
        grid_spec=pltpu.PrefetchScalarGridSpec(
            num_scalar_prefetch=1,
            # Batch innermost: the pe block index is constant across it, so the
            # pipeline skips redundant pe DMAs (pe read from HBM once per tile).
            grid=(nR, B),
            in_specs=[
                pl.BlockSpec((None, TR, C), lambda r, b, seed_ref: (b, r, 0)),  # x
                pl.BlockSpec((TR, C), lambda r, b, seed_ref: (r, 0)),           # pe f32
            ],
            out_specs=pl.BlockSpec((None, TR, C), lambda r, b, seed_ref: (b, r, 0)),
        ),
        compiler_params=pltpu.CompilerParams(
            # Independent output blocks along both axes -> shardable across
            # v7x's two TensorCores; no-op on single-core v5e/v6e.
            dimension_semantics=("parallel", "parallel")),
    )(seed_arr, x2, pe2)
    return out.reshape(B, S, D)


if __name__ == "__main__":
    B, S, D = 2, 8, 32
    MAX_LEN = 1000
    P_DROP = 0.1

    key = jax.random.PRNGKey(0)
    x = jax.random.normal(key, (B, S, D), dtype=jnp.float32)
    pe = _make_pe_table(MAX_LEN, D)
    ref = x + pe[:S][None, :, :]

    # --- Pallas kernel at the module's small shapes (force past the tiny-input
    # XLA bypass so the kernel itself is exercised). ---
    out_eval = positional_encoding_forward(
        x, pe, p=P_DROP, training=False, min_pallas_elements=0)
    out_eval = jax.block_until_ready(out_eval)
    assert out_eval.shape == (B, S, D)
    assert jnp.allclose(out_eval, ref, atol=1e-6), "eval-mode mismatch"

    # Training mode: Bernoulli(1-p) keep mask with inverted scaling 1/(1-p).
    # TODO(synk): torch's RNG stream cannot be reproduced bit-exactly; only the
    # dropout semantics (keep-prob 1-p, scale 1/(1-p)) are matched.
    out_train = positional_encoding_forward(
        x, pe, p=P_DROP, training=True, seed=1234, min_pallas_elements=0)
    out_train = jax.block_until_ready(out_train)
    nz = out_train != 0.0
    assert jnp.allclose(jnp.where(nz, out_train, 0.0),
                        jnp.where(nz, ref / (1.0 - P_DROP), 0.0),
                        atol=1e-5), "training-mode dropout scaling mismatch"
    frac = 1.0 - float(jnp.mean(nz.astype(jnp.float32)))
    assert 0.0 < frac < 0.5, f"implausible drop fraction {frac}"

    # --- Larger lane-dense case: multiple batches, full 128-lane rows. ---
    B2, S2, D2 = 2, 256, 128
    x_l = jax.random.normal(jax.random.PRNGKey(1), (B2, S2, D2), dtype=jnp.float32)
    pe_l = _make_pe_table(512, D2)
    ref_l = x_l + pe_l[:S2][None, :, :]
    out_le = jax.block_until_ready(
        positional_encoding_forward(x_l, pe_l, p=P_DROP, training=False))
    assert jnp.allclose(out_le, ref_l, atol=1e-6), "large eval mismatch"
    out_lt = jax.block_until_ready(
        positional_encoding_forward(x_l, pe_l, p=P_DROP, training=True, seed=7))
    nz_l = out_lt != 0.0
    assert jnp.allclose(jnp.where(nz_l, out_lt, 0.0),
                        jnp.where(nz_l, ref_l / (1.0 - P_DROP), 0.0),
                        atol=1e-5), "large training scaling mismatch"
    frac_l = 1.0 - float(jnp.mean(nz_l.astype(jnp.float32)))
    assert 0.05 < frac_l < 0.15, f"implausible drop fraction {frac_l}"

    # --- S*D not a multiple of 128: tiled natural-layout fallback (also hits
    # the single-batch row split that keeps both v7x TensorCores busy). ---
    B3, S3, D3 = 1, 16, 24
    x_f = jax.random.normal(jax.random.PRNGKey(2), (B3, S3, D3), dtype=jnp.float32)
    pe_f = _make_pe_table(64, D3)
    ref_f = x_f + pe_f[:S3][None, :, :]
    out_fe = jax.block_until_ready(
        positional_encoding_forward(x_f, pe_f, p=P_DROP, training=False,
                                    min_pallas_elements=0))
    assert jnp.allclose(out_fe, ref_f, atol=1e-6), "fallback eval mismatch"
    out_ft = jax.block_until_ready(
        positional_encoding_forward(x_f, pe_f, p=P_DROP, training=True, seed=3,
                                    min_pallas_elements=0))
    nz_f = out_ft != 0.0
    assert jnp.allclose(jnp.where(nz_f, out_ft, 0.0),
                        jnp.where(nz_f, ref_f / (1.0 - P_DROP), 0.0),
                        atol=1e-5), "fallback training scaling mismatch"
    frac_f = 1.0 - float(jnp.mean(nz_f.astype(jnp.float32)))
    assert 0.0 < frac_f < 0.5, f"implausible drop fraction {frac_f}"

    # --- Tiny-input dispatch (plain XLA, no kernel): must agree in eval mode. ---
    out_bypass = jax.block_until_ready(
        positional_encoding_forward(x, pe, p=P_DROP, training=False))
    assert jnp.allclose(out_bypass, ref, atol=1e-6), "bypass-path mismatch"

    print("KERNEL_OK")
</pallas_src>

<mosaic_0001>
module attributes {stable_mosaic.version = 11 : i64} {
  func.func @_pe_dropout_kernel(%arg0: i32, %arg1: i32, %arg2: memref<1xi32, #tpu.memory_space<smem>>, %arg3: memref<1x2x128xf32, #tpu.memory_space<vmem>>, %arg4: memref<2x128xf32, #tpu.memory_space<vmem>>, %arg5: memref<1x2x128xf32, #tpu.memory_space<vmem>>) attributes {dimension_semantics = [#tpu.dimension_semantics<parallel>, #tpu.dimension_semantics<parallel>], iteration_bounds = array<i64: 1, 2>, scalar_prefetch = 1 : i64, scratch_operands = 0 : i64, tpu.core_type = #tpu.core_type<tc>, window_params = [{transform_indices = @transform_0, window_bounds = array<i64: 1, 2, 128>}, {transform_indices = @transform_1, window_bounds = array<i64: 2, 128>}, {transform_indices = @transform_2, window_bounds = array<i64: 1, 2, 128>}]} {
    %c0 = arith.constant 0 : index
    %c0_0 = arith.constant 0 : index
    %c0_1 = arith.constant 0 : index
    %0 = vector.load %arg3[%c0, %c0_0, %c0_1] : memref<1x2x128xf32, #tpu.memory_space<vmem>>, vector<1x2x128xf32>
    %1 = vector.shape_cast %0 : vector<1x2x128xf32> to vector<2x128xf32>
    %c0_2 = arith.constant 0 : index
    %c0_3 = arith.constant 0 : index
    %2 = vector.load %arg4[%c0_2, %c0_3] : memref<2x128xf32, #tpu.memory_space<vmem>>, vector<2x128xf32>
    %3 = arith.addf %1, %2 : vector<2x128xf32>
    %c0_4 = arith.constant 0 : index
    %c0_5 = arith.constant 0 : index
    %c0_6 = arith.constant 0 : index
    %4 = vector.load %arg5[%c0_4, %c0_5, %c0_6] : memref<1x2x128xf32, #tpu.memory_space<vmem>>, vector<1x2x128xf32>
    %5 = vector.shape_cast %4 : vector<1x2x128xf32> to vector<2x128xf32>
    %6 = vector.shape_cast %3 : vector<2x128xf32> to vector<1x2x128xf32>
    tpu.vector_store %arg5[%c0_4, %c0_5, %c0_6], %6 {strides = array<i32>} : memref<1x2x128xf32, #tpu.memory_space<vmem>>, vector<1x2x128xf32>,
    return
  }
  func.func @transform_0(%arg0: i32, %arg1: i32, %arg2: memref<1xi32, #tpu.memory_space<smem>>) -> (i32, i32, i32) {
    %c0_i32 = arith.constant 0 : i32
    %c0_i32_0 = arith.constant 0 : i32
    return %arg1, %arg0, %c0_i32 : i32, i32, i32
  }
  func.func @transform_1(%arg0: i32, %arg1: i32, %arg2: memref<1xi32, #tpu.memory_space<smem>>) -> (i32, i32) {
    %c0_i32 = arith.constant 0 : i32
    %c0_i32_0 = arith.constant 0 : i32
    return %arg0, %c0_i32 : i32, i32
  }
  func.func @transform_2(%arg0: i32, %arg1: i32, %arg2: memref<1xi32, #tpu.memory_space<smem>>) -> (i32, i32, i32) {
    %c0_i32 = arith.constant 0 : i32
    %c0_i32_0 = arith.constant 0 : i32
    return %arg1, %arg0, %c0_i32 : i32, i32, i32
  }
}

</mosaic_0001>

<bundles_post_ra>
// kernel: tpu_custom_call.1
= control target key start
LH: loop header
LB: loop body
LE: loop exit
PB: predicated region body
PF: predicated region fallthrough
CT: control target
= control target key end

     0   :  { %9 = vsyncpa [#allocation5], 0  ;;  %s646_s0 = inlined_call_operand.<no memory space> [shape: s32[1], index: 0, kind: input, shape index: {}]   ;;  %s647_s1 = inlined_call_operand.hbm [shape: f32[2,2,128], index: 1, kind: input, shape index: {}]   ;;  %s648_s2 = inlined_call_operand.vmem [shape: f32[2,128], index: 2, kind: input, shape index: {}]   ;;  %s649_s3 = inlined_call_operand.hbm [shape: f32[2,2,128], index: 3, kind: output, shape index: {}]  }
   0x1   :  { %11 = vsyncpa [#allocation5 + $0x1], 0 }
   0x2   :  { %12 = vsyncpa [#allocation6], 0 }
   0x3   :  { %14 = vsyncpa [#allocation6 + $0x1], 0  ;;  %s523_s12 = smov 0   ;;  %s525_s13 = smov 0  }
   0x4   :  { %s527_s14 = smov 0   ;;  %s529_s0 = smov 0  }
   0x5   :  { %s531_s15 = smov 0   ;;  %s533_s16 = smov 0  }
   0x6 LB: > { %s313_s17 = sadd.s32 4294967295, %s501_s16   ;;  %s314_s18 = sadd.s32 4294967294, %s501_s16   ;;  %s501_s16 = sphi %s533_s16, %s20_s16   ;;  %s497_s15 = sphi %s531_s15, %s658_s15   ;;  %s493_s0 = sphi %s529_s0, %s657_s0   ;;  %s489_s14 = sphi %s527_s14, %s656_s14   ;;  %s485_s13 = sphi %s525_s13, %s655_s13   ;;  %s481_s12 = sphi %s523_s12, %s654_s12  }
   0x7   : > { %s29_s19 = sadd.s32 1, %s497_s15  ;;  %s41_s20 = sadd.s32 1, %s489_s14 }
   0x8   : > { %p30_p0 = scmp.ge.s32.totalorder %s29_s19, 2  ;;  %p48_p1 = scmp.ne.s32.totalorder %s489_s14, %s485_s13 }
   0x9   : > { %p49_p2 = scmp.eq.s32.totalorder %s501_s16, 0  ;;  %p54_p3 = scmp.ne.s32.totalorder %s485_s13, %s481_s12 }
   0xa   : > { %s660_s19 = smov (%p30_p0, %s29_s19), 0  ;;  %p55_p5 = scmp.eq.s32.totalorder %s313_s17, 0 }
   0xb   : > { %p564_p4 = por %p49_p2, %p48_p1  ;;  %s36_s22 = ssub.s32 %s497_s15, %s660_s19 }
   0xc   : > { %p106_p6 = scmp.eq.s32.totalorder %s313_s17, 1  ;;  %p39_p7 = scmp.eq.s32.totalorder %s36_s22, 0 }
   0xd   : > { %p570_p8 = por %p55_p5, %p54_p3  ;;  %p112_p10 = scmp.eq.s32.totalorder %s314_s18, 1 }
   0xe   : > { %p574_p9 = por %p106_p6, %p48_p1  ;;  %p317_p12 = scmp.ge.s32.totalorder %s501_s16, 2 }
   0xf   : > { %s579_s25 = scalar_select %p39_p7, %s489_s14, %s41_s20  }
  0x10   : > { %p581_p11 = por %p112_p10, %p54_p3  ;;  %p339_p13 = scmp.lt.s32.totalorder %s501_s16, 2 }
  0x11   : > { %s139_s27 = sand.u32 1, %s489_s14   ;;  %s319_s29 = sshll.u32 %s497_s15, 1 }
  0x12   : > { %s318_s28 = sshll.u32 %s139_s27, 1  ;;  %s148_s5 = scalar_lea.hbm %s647_s1, %s319_s29 }
  0x13   : > { %s143_s6 = scalar_lea.vmem [#allocation4], %s318_s28  ;;  %s150_s8 = sshll.u32 %s148_s5, 4  ;;  %s151_s8 = int_to_ptr.hbm [resolvable:$true] %s150_s8 }
  0x14   : > { %s152_s7 = sshll.u32 %s143_s6, 4  ;;  %p332_p0 = pnand %p339_p13, %p564_p4  ;;  %s153_s7 = int_to_ptr.vmem [resolvable:$true] %s152_s7 }
  0x15   : > { %p320_p1 = scmp.ge.s32.totalorder %s501_s16, 1  ;;  %p157_p2 = scmp.lt.s32.totalorder %s501_s16, 3 }
  0x16   : > { %s140_s9 = scalar_lea.sflag [#allocation5], %s139_s27 }
  0x17   : > { %334 = dma.hbm_to_vmem [thread:$0]  (!%p332_p0), %s151_s8, 32, %s153_s7, %s140_s9  }
  0x18   : > { %p158_p3 = pnand %p320_p1, %p157_p2 }
  0x19   : > { %s597_s10 = sand.u32 (!%p158_p3), 1, %s485_s13  }
  0x1a   : > { %161 = sbr.rel (%p158_p3) target bundleno = 47 (0x2f), region = 28  ;;  %s321_s11 = sshll.u32 (!%p158_p3), %s597_s10, 1 }
  0x1b   : > { %s164_s17 = scalar_lea.sflag (!%p158_p3), [#allocation5], %s597_s10  ;;  %s167_s18 = scalar_lea.vmem (!%p158_p3), [#allocation4], %s321_s11 }
  0x1f   : > { %472 = dma.done.wait (%p570_p8), %s164_s17, 32  }
  0x20   : > { %474 = vsyncadd (%p570_p8), %s164_s17, 4294967264  ;;  %s324_s20 = sshll.u32 %s493_s0, 1  ;;  %s192_s28 = scalar_lea.vmem [#allocation7], %s321_s11  ;;  %v197_v0 = vld [vmem:[%s167_s18] sm:$0x3] }
  0x21   : > { %s213_s27 = scalar_lea.hbm %s649_s3, %s324_s20  ;;  %s215_s29 = sshll.u32 %s192_s28, 4  ;;  %v198_v1 = vld [vmem:[%s648_s2] sm:$0x3]  ;;  %s216_s29 = int_to_ptr.vmem [resolvable:$true] %s215_s29 }
  0x22   : > { %s217_s30 = sshll.u32 %s213_s27, 4  ;;  %v199_v2 = vadd.f32 %v198_v1, %v197_v0  ;;  %s202_s23 = scalar_lea.sflag [#allocation6], %s597_s10  ;;  %s218_s30 = int_to_ptr.hbm [resolvable:$true] %s217_s30 }
  0x23   : > { %s433_s6 = sshra.s32 %s218_s30, 4  ;;  %s439_s9 = scalar_lea.hbm %s649_s3, 4  ;;  %s434_s6 = int_to_ptr.hbm [resolvable:$true] %s433_s6 }
  0x24   : > { %200 = vst [vmem:[%s192_s28] sm:$0x3] %v199_v2  ;;  %s435_s0 = scalar_lea.hbm %s434_s6, 2  ;;  %p440_p7 = scmp.lt.s32.totalorder %s434_s6, %s649_s3 }
  0x25   : > { %p436_p4 = scmp.ne.s32.totalorder %s434_s6, %s435_s0  ;;  %p441_p8 = scmp.lt.s32.totalorder %s439_s9, %s435_s0 }
  0x27   : > { %p437_p5 = pnand %p436_p4, %p574_p9  ;;  %p442_p10 = por %p441_p8, %p440_p7 }
  0x29   : > { %p438_p6 = pneg %p437_p5 }
  0x2b   : > { %p443_p13 = pnand %p442_p10, %p438_p6 }
  0x2d   : > { %446 = shalt.err (!%p443_p13)
}
  0x2e   : > { %329 = dma.vmem_to_hbm [thread:$0]  (%p574_p9), %s216_s29, 32, %s218_s30, %s202_s23  }
  0x2f PF: > { %s229_s10 = sand.u32 1, %s481_s12   ;;  %p336_p0 = pnand %p317_p12, %p581_p11 }
  0x30   : > { %s230_s18 = scalar_lea.sflag [#allocation6], %s229_s10 }
  0x31   : > { %p337_p1 = pneg %p336_p0 }
  0x33   : > { %476 = dma.done.wait (%p337_p1), %s230_s18, 32  }
  0x34   : > { %478 = vsyncadd (%p337_p1), %s230_s18, 4294967264  ;;  %s20_s16 = sadd.s32 1, %s501_s16   ;;  %s654_s12 = smov %s485_s13 }
  0x35   : > { %p17_p2 = scmp.ge.s32.totalorder %s20_s16, 4   ;;  %s655_s13 = smov %s489_s14 }
  0x36   : > { %s656_s14 = smov %s579_s25  ;;  %s657_s0 = smov %s497_s15 }
  0x37   : > { %s658_s15 = smov %s660_s19  ;;  %19 = sbr.rel (!%p17_p2) target bundleno = 6 (0x6), region = 76 }
  0x3c   :  { %236 = vsyncpa [#allocation5], 1 }
  0x3d   :  { %238 = vsyncpa [#allocation5 + $0x1], 1 }
  0x3e   :  { %239 = vsyncpa [#allocation6], 1 }
  0x3f   :  { %241 = vsyncpa [#allocation6 + $0x1], 1 }

</bundles_post_ra>
